<compile_context>
chip_gen: v5e
topology: v5e:2x2
jax: 0.10.0
libtpu: 0.0.40
codegen_flags: <defaults>
</compile_context>

<pallas_src>
import functools

import jax
import jax.numpy as jnp
from jax import lax
from jax.experimental import pallas as pl
from jax.experimental.pallas import tpu as pltpu


# Tap order contract shared by the kernel and the wrapper's weight reshape:
# tap t = (dh + 1) * 3 + (dw + 1) = kh * 3 + kw.
_TAPS = tuple((dh, dw) for dh in (-1, 0, 1) for dw in (-1, 0, 1))


# ---------------------------------------------------------------------------
# One-time, 1-vreg self-check (cached) of pltpu.roll's rotation direction.
# The kernel needs "v[:, p] = a[:, p + s]"; expressing that as a roll requires
# knowing whether pltpu.roll follows np.roll (elements move toward higher
# indices).  Runs once per process; keeps the tap-shift sign robust across
# Pallas versions at negligible cost.
# ---------------------------------------------------------------------------
_ROLL_MATCHES_NP = None


def _roll_matches_np() -> bool:
    global _ROLL_MATCHES_NP
    if _ROLL_MATCHES_NP is None:
        def probe(x_ref, o_ref):
            o_ref[...] = pltpu.roll(x_ref[...], 1, axis=1)

        x = lax.broadcasted_iota(jnp.float32, (8, 128), 1)   # x[i, j] = j
        y = pl.pallas_call(
            probe, out_shape=jax.ShapeDtypeStruct((8, 128), jnp.float32))(x)
        # np.roll(x, 1, axis=1)[0, 1] == x[0, 0] == 0.
        _ROLL_MATCHES_NP = bool(float(y[0, 1]) == 0.0)
    return _ROLL_MATCHES_NP


def double_conv_kernel(x_ref, w1_ref, b1_ref, w2_ref, b2_ref, o_ref, *,
                       H, W, roll_sign):
    """One batch element of DoubleConv, fully lane-dense.

    x_ref : (1, C_in,  H*W)   compute dtype
    w1_ref: (9, C_out, C_in)  compute dtype, tap-major (tap = kh*3 + kw)
    b1_ref: (C_out, 1)        f32
    w2_ref: (9, C_out, C_out) compute dtype, tap-major
    b2_ref: (C_out, 1)        f32
    o_ref : (1, C_out, H*W)   out dtype (lane-dense, unmasked stores)
    """
    HW = H * W
    x = x_ref[0]                                        # (C_in, H*W)

    # Border-validity masks for the 9 taps, built once from a lane iota and
    # shared by both convs (hoisted: JAX does not CSE broadcasts).
    pos = lax.broadcasted_iota(jnp.int32, (1, HW), 1)
    row, col = pos // W, pos % W
    row_ok = {-1: row >= 1, 0: None, 1: row <= H - 2}
    col_ok = {-1: col >= 1, 0: None, 1: col <= W - 2}
    masks = []
    for dh, dw in _TAPS:
        r, c = row_ok[dh], col_ok[dw]
        if r is None and c is None:
            masks.append(None)                          # center tap: always valid
        elif r is None:
            masks.append(c)
        elif c is None:
            masks.append(r)
        else:
            masks.append(jnp.logical_and(r, c))

    def conv3x3(a, w_ref, b):
        # out[:, p] = sum_{dh,dw} w[dh,dw] @ a[:, p + dh*W + dw]  (zero padding).
        # Per tap: XLU lane roll + VPU select, then one MXU dot; f32 accumulate.
        acc = None
        for t, (dh, dw) in enumerate(_TAPS):
            s = dh * W + dw
            v = a if s == 0 else pltpu.roll(a, (-s * roll_sign) % HW, axis=1)
            if masks[t] is not None:
                v = jnp.where(masks[t], v, 0)           # zero wrapped border lanes
            d = jnp.dot(w_ref[t], v, preferred_element_type=jnp.float32)
            acc = d if acc is None else acc + d
        return jnp.maximum(acc + b, 0.0)                # bias + ReLU in f32

    h1 = conv3x3(x, w1_ref, b1_ref[...])                # (C_out, H*W) f32
    h1 = h1.astype(x.dtype)                             # quantize for 2nd MXU pass
    h2 = conv3x3(h1, w2_ref, b2_ref[...])
    o_ref[0] = h2.astype(o_ref.dtype)                   # full-lane store


def double_conv(x_nchw, w1_oihw, b1, w2_oihw, b2, *,
                compute_dtype=jnp.bfloat16, out_dtype=None):
    """Fused DoubleConv forward.

    x_nchw: (B, C_in, H, W); weights in PyTorch OIHW layout; biases (C_out,).
    compute_dtype: dtype fed to the MXU (bf16 halves HBM traffic and hits the
      fast MXU rate on v5e/v6e/v7x).  Accumulation, bias add and ReLU are always
      f32; in the bf16 path the intermediate activation is quantized to bf16
      before the second conv (main source of the looser tolerance).  Use
      jnp.float32 for bit-tight agreement with the PyTorch reference.
    out_dtype: output dtype; defaults to compute_dtype (halves writeback).
    """
    B, C_in, H, W = x_nchw.shape
    C_out = w1_oihw.shape[0]
    HW = H * W
    if out_dtype is None:
        out_dtype = compute_dtype

    # Lane-dense input, no spatial pre-padding (border handled in-kernel).
    x_lane = x_nchw.reshape(B, C_in, HW).astype(compute_dtype)

    # Tap-major weights (9, C_out, C): must stay in lockstep with _TAPS order.
    w1_t = jnp.transpose(w1_oihw, (2, 3, 0, 1)).reshape(9, C_out, C_in)
    w2_t = jnp.transpose(w2_oihw, (2, 3, 0, 1)).reshape(9, C_out, C_out)
    w1_t = w1_t.astype(compute_dtype)
    w2_t = w2_t.astype(compute_dtype)
    b1c = b1.reshape(C_out, 1).astype(jnp.float32)
    b2c = b2.reshape(C_out, 1).astype(jnp.float32)

    roll_sign = 1 if _roll_matches_np() else -1
    kernel = functools.partial(double_conv_kernel, H=H, W=W, roll_sign=roll_sign)

    nbytes = lambda a: a.size * a.dtype.itemsize
    flops = 2 * (C_out * 9 * C_in + C_out * 9 * C_out) * HW * B
    bytes_accessed = (nbytes(x_lane) + nbytes(w1_t) + nbytes(w2_t)
                      + nbytes(b1c) + nbytes(b2c)
                      + B * C_out * HW * jnp.dtype(out_dtype).itemsize)

    out = pl.pallas_call(
        kernel,
        out_shape=jax.ShapeDtypeStruct((B, C_out, HW), out_dtype),
        grid_spec=pltpu.PrefetchScalarGridSpec(
            num_scalar_prefetch=0,
            grid=(B,),
            in_specs=[
                pl.BlockSpec((1, C_in, HW), lambda b: (b, 0, 0)),
                pl.BlockSpec((9, C_out, C_in), lambda b: (0, 0, 0)),
                pl.BlockSpec((C_out, 1), lambda b: (0, 0)),
                pl.BlockSpec((9, C_out, C_out), lambda b: (0, 0, 0)),
                pl.BlockSpec((C_out, 1), lambda b: (0, 0)),
            ],
            out_specs=pl.BlockSpec((1, C_out, HW), lambda b: (b, 0, 0)),
        ),
        compiler_params=pltpu.CompilerParams(
            dimension_semantics=("parallel",),
            vmem_limit_bytes=32 * 1024 * 1024,
        ),
        cost_estimate=pl.CostEstimate(
            flops=flops, transcendentals=0, bytes_accessed=bytes_accessed),
    )(x_lane, w1_t, b1c, w2_t, b2c)

    # (B, C_out, H*W) -> (B, C_out, H, W): contiguous row-major reshape (free).
    return out.reshape(B, C_out, H, W)


def _reference(x_nchw, w1, b1, w2, b2):
    """Plain-JAX reference matching torch.nn.Conv2d(k=3, padding=1) + ReLU, twice."""
    dn = lax.conv_dimension_numbers(x_nchw.shape, w1.shape, ("NCHW", "OIHW", "NCHW"))
    y = lax.conv_general_dilated(x_nchw, w1, (1, 1), [(1, 1), (1, 1)],
                                 dimension_numbers=dn)
    y = jnp.maximum(y + b1[None, :, None, None], 0.0)
    y = lax.conv_general_dilated(y, w2, (1, 1), [(1, 1), (1, 1)],
                                 dimension_numbers=dn)
    y = jnp.maximum(y + b2[None, :, None, None], 0.0)
    return y


if __name__ == "__main__":
    B, C_in, C_out, H, W = 2, 4, 8, 16, 16

    key = jax.random.PRNGKey(0)
    kx, kw1, kb1, kw2, kb2 = jax.random.split(key, 5)

    x = jax.random.normal(kx, (B, C_in, H, W), dtype=jnp.float32)
    # Deterministic synthetic parameters (shapes per nn.Conv2d(in_c, out_c, 3, padding=1)).
    w1 = jax.random.normal(kw1, (C_out, C_in, 3, 3), dtype=jnp.float32) * 0.1
    b1 = jax.random.normal(kb1, (C_out,), dtype=jnp.float32) * 0.1
    w2 = jax.random.normal(kw2, (C_out, C_out, 3, 3), dtype=jnp.float32) * 0.1
    b2 = jax.random.normal(kb2, (C_out,), dtype=jnp.float32) * 0.1

    ref = jax.block_until_ready(_reference(x, w1, b1, w2, b2))

    # Exact-semantics path (f32 MXU operands, f32 output) -- tight tolerance.
    out_f32 = jax.block_until_ready(
        double_conv(x, w1, b1, w2, b2,
                    compute_dtype=jnp.float32, out_dtype=jnp.float32))
    assert out_f32.shape == (B, C_out, H, W)
    assert jnp.allclose(out_f32, ref, atol=1e-4, rtol=1e-4), "f32 mismatch vs reference"

    # Optimized path (bf16 MXU operands + bf16 writeback, f32 accumulation).
    out_bf16 = jax.block_until_ready(double_conv(x, w1, b1, w2, b2))
    assert out_bf16.shape == (B, C_out, H, W)
    assert out_bf16.dtype == jnp.bfloat16
    assert jnp.allclose(out_bf16.astype(jnp.float32), ref, atol=4e-2, rtol=4e-2), \
        "bf16 mismatch vs reference"

    print("KERNEL_OK")
</pallas_src>

<mosaic_0001>
module attributes {stable_mosaic.version = 11 : i64} {
  func.func @probe(%arg0: memref<8x128xf32, #tpu.memory_space<vmem>>, %arg1: memref<8x128xf32, #tpu.memory_space<vmem>>) attributes {dimension_semantics = [], scalar_prefetch = 0 : i64, scratch_operands = 0 : i64, tpu.core_type = #tpu.core_type<tc>} {
    %c0 = arith.constant 0 : index
    %c0_0 = arith.constant 0 : index
    %0 = vector.load %arg0[%c0, %c0_0] : memref<8x128xf32, #tpu.memory_space<vmem>>, vector<8x128xf32>
    %c1_i32 = arith.constant 1 : i32
    %1 = tpu.dynamic_rotate %0 by %c1_i32 dim 1 : vector<8x128xf32>, i32 -> vector<8x128xf32>
    %c0_1 = arith.constant 0 : index
    %c0_2 = arith.constant 0 : index
    %2 = vector.load %arg1[%c0_1, %c0_2] : memref<8x128xf32, #tpu.memory_space<vmem>>, vector<8x128xf32>
    tpu.vector_store %arg1[%c0_1, %c0_2], %1 {strides = array<i32>} : memref<8x128xf32, #tpu.memory_space<vmem>>, vector<8x128xf32>,
    return
  }
}

</mosaic_0001>

<bundles_post_ra>
// kernel: tpu_custom_call.1
= control target key start
LH: loop header
LB: loop body
LE: loop exit
PB: predicated region body
PF: predicated region fallthrough
CT: control target
= control target key end

     0   :  { %6 = vsyncpa [#allocation3], 0  ;;  %s118_s0 = inlined_call_operand.hbm [shape: f32[8,128], index: 0, kind: input, shape index: {}]   ;;  %s119_s1 = inlined_call_operand.hbm [shape: f32[8,128], index: 1, kind: output, shape index: {}]  }
   0x1   :  { %7 = vsyncpa [#allocation4], 0  ;;  %s13_s8 = sshll.u32 %s118_s0, 4  ;;  %s99_s9 = smov [#allocation2]   ;;  %s14_s8 = int_to_ptr.hbm [resolvable:$true] %s13_s8 }
   0x2   :  { %s15_s10 = sshll.u32 %s99_s9, 4  ;;  %s16_s10 = int_to_ptr.vmem [resolvable:$true] %s15_s10 }
   0x3   :  { %18 = dma.hbm_to_vmem [thread:$0]  %s14_s8, 128, %s16_s10, [#allocation3]  }
   0x4   :  { %95 = dma.done.wait [#allocation3], 128  }
   0x5   :  { %96 = vsyncadd [#allocation3], 4294967168  ;;  %v23_v0 = vld [vmem:[#allocation2] sm:$0xff]  ;;  %s100_s11 = smov 1   ;;  %s101_s12 = smov [#allocation5]  }
   0x6   :  { %24 = vrot.lane.b32.xlu0 %v23_v0, %s100_s11  ;;  %s32_s13 = sshll.u32 %s101_s12, 4  ;;  %s34_s16 = sshll.u32 %s119_s1, 4  ;;  %s33_s13 = int_to_ptr.vmem [resolvable:$true] %s32_s13  ;;  %s35_s16 = int_to_ptr.hbm [resolvable:$true] %s34_s16 }
  0x78   :  { %v25_v1 = vpop.permute.xlu0 %24 }
  0x79   :  { %26 = vst [vmem:[#allocation5] sm:$0xff] %v25_v1 }
  0x7a   :  { %37 = dma.vmem_to_hbm [thread:$0]  %s33_s13, 128, %s35_s16, [#allocation4]  }
  0x7b   :  { %97 = dma.done.wait [#allocation4], 128  }
  0x7c   :  { %98 = vsyncadd [#allocation4], 4294967168 }
  0x7d   :  { %42 = vsyncpa [#allocation3], 1 }
  0x7e   :  { %43 = vsyncpa [#allocation4], 1 }

</bundles_post_ra>
